<compile_context>
chip_gen: v6e
topology: v6e:2x2x1
jax: 0.10.0
libtpu: 0.0.40
codegen_flags: <defaults>
</compile_context>

<pallas_src>
import functools
import math

import jax
import jax.numpy as jnp
import numpy as np
from jax.experimental import pallas as pl
from jax.experimental.pallas import tpu as pltpu


def _round_up(x, m):
    return ((x + m - 1) // m) * m


def _conv_bn_relu_kernel(x_ref, w_ref, shift_ref, o_ref, *, k, stride, tile_l):
    # x_ref:     (Cin_pad, Lscratch)  pre-padded row, resident across L tiles
    # w_ref:     (Cout, K*Cin_pad)    im2col weight, BN scale folded (resident)
    # shift_ref: (Cout, 1)            folded BN shift + conv bias   (resident)
    # o_ref:     (Cout, TILE_L)       lane-dense output tile
    lt = pl.program_id(1)
    cin_pad = x_ref.shape[0]

    # Input window needed by this output tile: [s0, s0 + win).
    win = (tile_l - 1) * stride + k
    s0 = pl.multiple_of(lt * (tile_l * stride), tile_l * stride)
    window = x_ref[:, pl.ds(s0, win)]                          # (Cin_pad, win)

    # im2col patch: K shifted taps stacked along sublanes.  Cin_pad is a
    # multiple of the sublane pack, so this concatenation needs no relayout.
    taps = [
        jax.lax.slice(window, (0, t),
                      (cin_pad, t + (tile_l - 1) * stride + 1),
                      (1, stride))                             # (Cin_pad, TILE_L)
        for t in range(k)
    ]
    patch = jnp.concatenate(taps, axis=0)                      # (K*Cin_pad, TILE_L)

    # Single MXU matmul, contraction depth K*Cin_pad, f32 accumulation.
    acc = jnp.dot(w_ref[...], patch,
                  preferred_element_type=jnp.float32)          # (Cout, TILE_L)

    # BN scale already folded into the weights: only shift + ReLU remain.
    o_ref[...] = jnp.maximum(acc + shift_ref[...], 0.0).astype(o_ref.dtype)


def basic_conv1d(x, weight, bias, gamma, beta, running_mean, running_var,
                 *, stride=1, padding=0, eps=1e-3, tile_l=512,
                 mxu_dtype=jnp.bfloat16):
    """BasicConv1d forward: Conv1d -> BatchNorm1d(eval) -> ReLU."""
    n, cin, l = x.shape
    cout, cin_w, k = weight.shape
    assert cin == cin_w
    assert tile_l % 128 == 0

    cdt = jnp.dtype(mxu_dtype)
    pack = (8 * 4) // cdt.itemsize              # sublane pack: 8 f32 / 16 bf16
    cin_pad = _round_up(cin, pack)

    lout = (l + 2 * padding - k) // stride + 1
    tile_l = min(tile_l, _round_up(lout, 128))
    n_lt = pl.cdiv(lout, tile_l)
    lout_pad = n_lt * tile_l

    # Scratch-row length: covers the last padded tile's last tap AND the
    # left-padded input, rounded to a full lane tile.
    scratch_len = _round_up(max((lout_pad - 1) * stride + k, padding + l), 128)

    # Fold BN (inference) + conv bias: scale goes into the weights (in f32,
    # before any narrow cast), shift stays as the per-channel epilogue add.
    scale = gamma / jnp.sqrt(running_var + eps)                  # (Cout,)
    shift = beta + (bias - running_mean) * scale                 # (Cout,)
    shift2d = shift.reshape(cout, 1).astype(jnp.float32)

    # im2col weight layout: w2[o, t*Cin_pad + c] = weight[o, c, t] * scale[o].
    w_t = jnp.transpose(weight, (0, 2, 1))                       # (Cout, K, Cin)
    if cin_pad != cin:
        w_t = jnp.pad(w_t, ((0, 0), (0, 0), (0, cin_pad - cin)))
    w2 = (w_t * scale[:, None, None]).reshape(cout, k * cin_pad).astype(cdt)

    # Pre-pad the input once in HBM: channel pad to the sublane pack, conv
    # left-pad, and right pad to the tile-aligned scratch length.  The padded
    # row is then a plain BlockSpec block (constant index along the L-tile
    # axis) -> DMA'd once per row, prefetched by the pipeline, zero in-kernel
    # setup work.
    x_p = x.astype(cdt)
    x_p = jnp.pad(x_p, ((0, 0),
                        (0, cin_pad - cin),
                        (padding, scratch_len - padding - l)))

    kernel = functools.partial(_conv_bn_relu_kernel,
                               k=k, stride=stride, tile_l=tile_l)

    # Explicit VMEM budget (v5e default scoped limit is only 16 MiB).
    itm = cdt.itemsize
    out_itm = jnp.dtype(x.dtype).itemsize
    need = (2 * cin_pad * scratch_len * itm        # resident row (dbl-buffered)
            + 2 * cout * k * cin_pad * itm         # weights
            + 2 * cout * 4                         # shift
            + 2 * cout * tile_l * out_itm)         # output tile
    vmem_limit = int(min(max(need + (4 << 20), 16 << 20), 100 << 20))

    out = pl.pallas_call(
        kernel,
        out_shape=jax.ShapeDtypeStruct((n, cout, lout_pad), x.dtype),
        grid_spec=pltpu.PrefetchScalarGridSpec(
            num_scalar_prefetch=0,
            grid=(n, n_lt),
            in_specs=[
                # pre-padded row: resident across the L-tile axis
                pl.BlockSpec((None, cin_pad, scratch_len),
                             lambda b, lt: (b, 0, 0)),
                # weights / shift: constant index map -> fetched once
                pl.BlockSpec((cout, k * cin_pad), lambda b, lt: (0, 0)),
                pl.BlockSpec((cout, 1), lambda b, lt: (0, 0)),
            ],
            out_specs=pl.BlockSpec((None, cout, tile_l),
                                   lambda b, lt: (b, 0, lt)),
        ),
        compiler_params=pltpu.CompilerParams(
            dimension_semantics=("parallel", "parallel"),
            vmem_limit_bytes=vmem_limit),
    )(x_p, w2, shift2d)

    if lout_pad != lout:
        out = out[:, :, :lout]
    return out


def _reference(x, weight, bias, gamma, beta, rmean, rvar,
               *, stride, padding, eps):
    y = jax.lax.conv_general_dilated(
        x, weight,
        window_strides=(stride,),
        padding=[(padding, padding)],
        dimension_numbers=("NCH", "OIH", "NCH"))
    y = y + bias[None, :, None]
    y = (y - rmean[None, :, None]) / jnp.sqrt(rvar[None, :, None] + eps)
    y = gamma[None, :, None] * y + beta[None, :, None]
    return jnp.maximum(y, 0.0)


if __name__ == "__main__":
    # small shapes consistent with the module
    N, CIN, COUT, L, K = 2, 4, 8, 16, 3
    STRIDE, PADDING, EPS = 1, 1, 1e-3

    key = jax.random.PRNGKey(0)
    kx, kw, kb = jax.random.split(key, 3)

    x = jax.random.normal(kx, (N, CIN, L), dtype=jnp.float32)

    # deterministic parameter init (PyTorch-style uniform bound for conv)
    bound = 1.0 / math.sqrt(CIN * K)
    weight = jax.random.uniform(kw, (COUT, CIN, K), jnp.float32, -bound, bound)
    bias = jax.random.uniform(kb, (COUT,), jnp.float32, -bound, bound)

    # BatchNorm1d default init (inference-mode fold)
    gamma = jnp.ones((COUT,), jnp.float32)
    beta = jnp.zeros((COUT,), jnp.float32)
    running_mean = jnp.zeros((COUT,), jnp.float32)
    running_var = jnp.ones((COUT,), jnp.float32)

    ref = _reference(x, weight, bias, gamma, beta, running_mean, running_var,
                     stride=STRIDE, padding=PADDING, eps=EPS)

    # default (performance) path: bf16 MXU operands, f32 accumulation
    out_bf16 = basic_conv1d(x, weight, bias, gamma, beta,
                            running_mean, running_var,
                            stride=STRIDE, padding=PADDING, eps=EPS)
    out_bf16 = jax.block_until_ready(out_bf16)
    np.testing.assert_allclose(np.asarray(out_bf16), np.asarray(ref),
                               rtol=5e-2, atol=5e-2)

    # exact path: f32 MXU operands
    out_f32 = basic_conv1d(x, weight, bias, gamma, beta,
                           running_mean, running_var,
                           stride=STRIDE, padding=PADDING, eps=EPS,
                           mxu_dtype=jnp.float32)
    out_f32 = jax.block_until_ready(out_f32)
    np.testing.assert_allclose(np.asarray(out_f32), np.asarray(ref),
                               rtol=1e-5, atol=1e-5)

    print("KERNEL_OK")
</pallas_src>

<mosaic_0001>
module attributes {stable_mosaic.version = 11 : i64} {
  func.func @_conv_bn_relu_kernel(%arg0: i32, %arg1: i32, %arg2: memref<1x16x256xbf16, #tpu.memory_space<vmem>>, %arg3: memref<8x48xbf16, #tpu.memory_space<vmem>>, %arg4: memref<8x1xf32, #tpu.memory_space<vmem>>, %arg5: memref<1x8x128xf32, #tpu.memory_space<vmem>>) attributes {dimension_semantics = [#tpu.dimension_semantics<parallel>, #tpu.dimension_semantics<parallel>], iteration_bounds = array<i64: 2, 1>, scalar_prefetch = 0 : i64, scratch_operands = 0 : i64, tpu.core_type = #tpu.core_type<tc>, window_params = [{transform_indices = @transform_0, window_bounds = array<i64: 1, 16, 256>}, {pipeline_mode = #tpu.pipeline_mode<synchronous>, transform_indices = @transform_1, window_bounds = array<i64: 8, 48>}, {pipeline_mode = #tpu.pipeline_mode<synchronous>, transform_indices = @transform_2, window_bounds = array<i64: 8, 1>}, {transform_indices = @transform_3, window_bounds = array<i64: 1, 8, 128>}]} {
    %c128_i32 = arith.constant 128 : i32
    %0 = arith.muli %arg1, %c128_i32 : i32
    %1 = tpu.assume_multiple %0, 128 : i32
    %c0 = arith.constant 0 : index
    %c0_0 = arith.constant 0 : index
    %2 = arith.index_cast %1 : i32 to index
    %3 = vector.load %arg2[%c0, %c0_0, %2] : memref<1x16x256xbf16, #tpu.memory_space<vmem>>, vector<1x16x130xbf16>
    %4 = vector.shape_cast %3 : vector<1x16x130xbf16> to vector<16x130xbf16>
    %5 = vector.extract_strided_slice %4 {offsets = [0, 0], sizes = [16, 128], strides = [1, 1]} : vector<16x130xbf16> to vector<16x128xbf16>
    %6 = vector.extract_strided_slice %4 {offsets = [0, 1], sizes = [16, 128], strides = [1, 1]} : vector<16x130xbf16> to vector<16x128xbf16>
    %7 = vector.extract_strided_slice %4 {offsets = [0, 2], sizes = [16, 128], strides = [1, 1]} : vector<16x130xbf16> to vector<16x128xbf16>
    %8 = tpu.concatenate %5, %6, %7 in 0 : vector<16x128xbf16>, vector<16x128xbf16>, vector<16x128xbf16> -> vector<48x128xbf16>
    %c0_1 = arith.constant 0 : index
    %c0_2 = arith.constant 0 : index
    %9 = vector.load %arg3[%c0_1, %c0_2] : memref<8x48xbf16, #tpu.memory_space<vmem>>, vector<8x48xbf16>
    %cst = arith.constant dense<0.000000e+00> : vector<8x128xf32>
    %10 = tpu.matmul %9, %8, %cst {dimension_numbers = #tpu.dot_dimension_numbers<[1], [0], [0], [1], [0, 0, 1, 1], [], []>} : vector<8x48xbf16>, vector<48x128xbf16>, vector<8x128xf32> -> vector<8x128xf32>
    %c0_3 = arith.constant 0 : index
    %c0_4 = arith.constant 0 : index
    %11 = vector.load %arg4[%c0_3, %c0_4] : memref<8x1xf32, #tpu.memory_space<vmem>>, vector<8x1xf32>
    %12 = vector.broadcast %11 : vector<8x1xf32> to vector<8x128xf32>
    %13 = arith.addf %10, %12 : vector<8x128xf32>
    %cst_5 = arith.constant 0.000000e+00 : f32
    %14 = vector.broadcast %cst_5 : f32 to vector<8x128xf32>
    %15 = arith.maximumf %13, %14 : vector<8x128xf32>
    %c0_6 = arith.constant 0 : index
    %c0_7 = arith.constant 0 : index
    %c0_8 = arith.constant 0 : index
    %16 = vector.load %arg5[%c0_6, %c0_7, %c0_8] : memref<1x8x128xf32, #tpu.memory_space<vmem>>, vector<1x8x128xf32>
    %17 = vector.shape_cast %16 : vector<1x8x128xf32> to vector<8x128xf32>
    %18 = vector.shape_cast %15 : vector<8x128xf32> to vector<1x8x128xf32>
    tpu.vector_store %arg5[%c0_6, %c0_7, %c0_8], %18 {strides = array<i32>} : memref<1x8x128xf32, #tpu.memory_space<vmem>>, vector<1x8x128xf32>,
    return
  }
  func.func @transform_0(%arg0: i32, %arg1: i32) -> (i32, i32, i32) {
    %c0_i32 = arith.constant 0 : i32
    %c0_i32_0 = arith.constant 0 : i32
    %c0_i32_1 = arith.constant 0 : i32
    return %arg0, %c0_i32, %c0_i32_0 : i32, i32, i32
  }
  func.func @transform_1(%arg0: i32, %arg1: i32) -> (i32, i32) {
    %c0_i32 = arith.constant 0 : i32
    %c0_i32_0 = arith.constant 0 : i32
    %c0_i32_1 = arith.constant 0 : i32
    return %c0_i32, %c0_i32_0 : i32, i32
  }
  func.func @transform_2(%arg0: i32, %arg1: i32) -> (i32, i32) {
    %c0_i32 = arith.constant 0 : i32
    %c0_i32_0 = arith.constant 0 : i32
    %c0_i32_1 = arith.constant 0 : i32
    return %c0_i32, %c0_i32_0 : i32, i32
  }
  func.func @transform_3(%arg0: i32, %arg1: i32) -> (i32, i32, i32) {
    %c0_i32 = arith.constant 0 : i32
    %c0_i32_0 = arith.constant 0 : i32
    return %arg0, %c0_i32, %arg1 : i32, i32, i32
  }
}

</mosaic_0001>

<bundles_post_ra>
// kernel: tpu_custom_call.1
= control target key start
LH: loop header
LB: loop body
LE: loop exit
PB: predicated region body
PF: predicated region fallthrough
CT: control target
= control target key end

     0   :  { %8 = vsyncpa [#allocation3], 0  ;;  %s778_s0 = inlined_call_operand.hbm [shape: bf16[2,16,256], index: 0, kind: input, shape index: {}]   ;;  %s779_s1 = inlined_call_operand.vmem [shape: bf16[8,48], index: 1, kind: input, shape index: {}]   ;;  %s780_s2 = inlined_call_operand.vmem [shape: f32[8,1], index: 2, kind: input, shape index: {}]   ;;  %s781_s3 = inlined_call_operand.hbm [shape: f32[2,8,128], index: 3, kind: output, shape index: {}]  }
   0x1   :  { %10 = vsyncpa [#allocation3 + $0x1], 0 }
   0x2   :  { %11 = vsyncpa [#allocation4], 0 }
   0x3   :  { %13 = vsyncpa [#allocation4 + $0x1], 0  ;;  %s627_s12 = smov 0   ;;  %s629_s13 = smov 0  }
   0x4   :  { %s631_s14 = smov 0   ;;  %s633_s15 = smov 0  }
   0x5   :  { %s635_s16 = smov 0   ;;  %s637_s17 = smov 0  }
   0x6 LB: > { %s383_s18 = sadd.s32 4294967295, %s596_s17   ;;  %s384_s19 = sadd.s32 4294967294, %s596_s17   ;;  %s596_s17 = sphi %s637_s17, %s19_s17   ;;  %s592_s16 = sphi %s635_s16, %s792_s16   ;;  %s588_s15 = sphi %s633_s15, %s791_s15   ;;  %s584_s14 = sphi %s631_s14, %s790_s14   ;;  %s580_s13 = sphi %s629_s13, %s789_s13   ;;  %s576_s12 = sphi %s627_s12, %s788_s12  }
   0x7   : > { %s31_s20 = sadd.s32 1, %s592_s16  ;;  %s38_s21 = sadd.s32 1, %s584_s14 }
   0x8   : > { %p33_p0 = scmp.ge.s32.totalorder %s31_s20, 2  ;;  %p45_p1 = scmp.ne.s32.totalorder %s584_s14, %s580_s13 }
   0x9   : > { %p46_p2 = scmp.eq.s32.totalorder %s596_s17, 0  ;;  %p51_p3 = scmp.ne.s32.totalorder %s580_s13, %s576_s12 }
   0xa   : > { %s794_s20 = smov (%p33_p0, %s31_s20), 0  ;;  %p52_p5 = scmp.eq.s32.totalorder %s383_s18, 0 }
   0xb   : > { %p668_p4 = por %p46_p2, %p45_p1  ;;  %s35_s23 = ssub.s32 %s592_s16, %s794_s20 }
   0xc   : > { %p119_p6 = scmp.eq.s32.totalorder %s383_s18, 1  ;;  %p36_p7 = scmp.eq.s32.totalorder %s35_s23, 0 }
   0xd   : > { %p674_p8 = por %p52_p5, %p51_p3  ;;  %p125_p10 = scmp.eq.s32.totalorder %s384_s19, 1 }
   0xe   : > { %p678_p9 = por %p119_p6, %p45_p1  ;;  %p427_p13 = scmp.lt.s32.totalorder %s596_s17, 2 }
   0xf   : > { %s683_s26 = scalar_select %p36_p7, %s584_s14, %s38_s21  }
  0x10   : > { %p685_p11 = por %p125_p10, %p51_p3  ;;  %s151_s28 = sand.u32 1, %s584_s14  }
  0x11   : > { %s387_s29 = sshll.u32 %s151_s28, 4  ;;  %s400_s30 = sshll.u32 %s592_s16, 8 }
  0x12   : > { %s161_s6 = scalar_lea.hbm %s778_s0, %s400_s30  ;;  %s155_s7 = scalar_lea.vmem [#allocation2], %s387_s29 }
  0x13   : > { %s162_s8 = sshll.u32 %s155_s7, 4  ;;  %p698_p0 = pnand %p427_p13, %p668_p4  ;;  %s163_s8 = int_to_ptr.vmem [resolvable:$true] %s162_s8 }
  0x14   : > { %p390_p1 = scmp.ge.s32.totalorder %s596_s17, 1  ;;  %s152_s10 = scalar_lea.sflag [#allocation3], %s151_s28 }
  0x15   : > { %p490_p2 = pneg %p698_p0  ;;  %s501_s11 = scalar_lea.vmem %s163_s8, 256 }
  0x16   : > { %p502_p3 = scmp.ne.s32.totalorder %s163_s8, %s501_s11  ;;  %s598_s18 = smov [#allocation2]  }
  0x17   : > { %s506_s19 = sshll.u32 %s598_s18, 4  ;;  %s507_s19 = int_to_ptr.vmem [resolvable:$false] %s506_s19 }
  0x18   : > { %p504_p5 = pnand %p502_p3, %p490_p2  ;;  %s508_s21 = scalar_lea.vmem %s507_s19, 512 }
  0x19   : > { %p509_p7 = scmp.lt.s32.totalorder %s163_s8, %s507_s19  ;;  %p510_p10 = scmp.lt.s32.totalorder %s508_s21, %s501_s11 }
  0x1a   : > { %p505_p6 = pneg %p504_p5 }
  0x1b   : > { %p511_p12 = por %p510_p10, %p509_p7 }
  0x1d   : > { %p512_p4 = pnand %p511_p12, %p505_p6 }
  0x1f   : > { %515 = shalt.err (!%p512_p4)
}
  0x20   : > { %s599_s22 = smov 128   ;;  %s600_s23 = smov 8  }
  0x21   : > { %422 = dma.hbm_to_vmem [thread:$0]  (!%p698_p0), %s161_s6, 256, %s163_s8, %s152_s10, %s599_s22, %s599_s22, %s600_s23  }
  0x22   : > { %p170_p13 = scmp.lt.s32.totalorder %s596_s17, 3 }
  0x24   : > { %p171_p2 = pnand %p390_p1, %p170_p13 }
  0x25   : > { %s711_s28 = sand.u32 (!%p171_p2), 1, %s580_s13  }
  0x26   : > { %174 = sbr.rel (%p171_p2) target bundleno = 388 (0x184), region = 32  ;;  %s391_s29 = sshll.u32 (!%p171_p2), %s711_s28, 4 }
  0x27   : > { %s177_s30 = scalar_lea.sflag (!%p171_p2), [#allocation3], %s711_s28  ;;  %s180_s4 = scalar_lea.vmem (!%p171_p2), [#allocation2], %s391_s29 }
  0x2b   : > { %567 = dma.done.wait (%p674_p8), %s177_s30, 256  }
  0x2c   : > { %569 = vsyncadd (%p674_p8), %s177_s30, 4294967040  ;;  %v601_v0 = vmov 0.0   ;;  %v485_v1 = vld [vmem:[%s180_s4] ss:$8 sps:$4 sm:$0xff]   ;;  %s602_s5 = smov 127   ;;  %s603_s6 = smov 126  }
  0x2d   : > { %405 = vmatprep.subr.bf16.mxu0 %v601_v0  ;;  %220 = vrot.lane.b32.xlu1 %v485_v1, %s602_s5  ;;  %v487_v2 = vld [vmem:[%s180_s4 + $0x4] ss:$8 sps:$4 sm:$0xff]   ;;  %vm604_vm0 = vmmov 0   ;;  %v605_v3 = vmov 0   ;;  %vm231_vm1 = vcmask 1031168   ;;  %vm224_vm2 = vcmask 1039360  }
  0x2e   : > { %227 = vrot.lane.b32.xlu0 %v485_v1, %s603_s6  ;;  %411 = vmatprep.mubr.msk.bf16.mxu0 %vm604_vm0, %v601_v0  ;;  %v235_v4 = vld [vmem:[%s780_s2] sm:$0xff]  ;;  %vm241_vm3 = vcmask 392192   ;;  %s392_s10 = sshll.u32 %s711_s28, 3  ;;  %s397_s11 = sshll.u32 %s588_s15, 7 }
  0x2f   : > { %484 = vset.pattern.permute.xlu0 %v605_v3  ;;  %v234_v11 = vld [vmem:[%s779_s1] sm:$0xf]  ;;  %s202_s18 = scalar_lea.vmem [#allocation5], %s392_s10  ;;  %s730_s23 = scalar_lea.hbm %s781_s3, %s397_s11 }
  0x30   : > { %s302_s19 = sshll.u32 %s202_s18, 4  ;;  %s288_s29 = scalar_lea.sflag [#allocation4], %s711_s28  ;;  %s732_s19 = int_to_ptr.vmem [resolvable:$true] %s302_s19 }
  0x31   : > { %222 = vrot.lane.b32.xlu1 %v487_v2, %s602_s5  ;;  %s516_s15 = scalar_lea.vmem %s732_s19, 128  ;;  %s606_s30 = smov [#allocation5]  }
  0x32   : > { %229 = vrot.lane.b32.xlu0 %v487_v2, %s603_s6  ;;  %p517_p8 = scmp.ne.s32.totalorder %s732_s19, %s516_s15  ;;  %s520_s4 = sshll.u32 %s606_s30, 4  ;;  %s521_s4 = int_to_ptr.vmem [resolvable:$false] %s520_s4 }
  0x33   : > { %s522_s5 = scalar_lea.vmem %s521_s4, 256  ;;  %p523_p1 = scmp.lt.s32.totalorder %s732_s19, %s521_s4 }
  0x34   : > { %p518_p12 = pnand %p517_p8, %p678_p9  ;;  %p524_p3 = scmp.lt.s32.totalorder %s522_s5, %s516_s15 }
  0x36   : > { %238 = vperm.xlu0 %484, %v235_v4   ;;  %p519_p0 = pneg %p518_p12  ;;  %p525_p5 = por %p524_p3, %p523_p1 }
  0x38   : > { %p526_p6 = pnand %p525_p5, %p519_p0 }
  0x9f   : > { %v221_v5 = vpop.permute.xlu1 %220 }
  0xa0   : > { %v228_v6 = vpop.permute.xlu0 %227 }
  0xa3   : > { %v223_v9 = vpop.permute.xlu1 %222 }
  0xa4   : > { %v230_v7 = vpop.permute.xlu0 %229  ;;  %v225_v10 = vsel %vm224_vm2, %v221_v5, %v223_v9 }
  0xa5   : > { %v232_v8 = vsel %vm231_vm1, %v228_v6, %v230_v7 }
  0xa6   : > { %406 = vmatpush3.bf16.msra.mxu0 %v232_v8 }
  0xa7   : > { %407 = vmatprep.subr.bf16.mxu0 %v601_v0 }
  0xaa   : > { %408 = vmatpush3.bf16.msra.mxu0 %v225_v10 }
  0xab   : > { %409 = vmatprep.subr.bf16.mxu0 %v601_v0 }
  0xae   : > { %410 = vmatpush3.bf16.msra.mxu0 %v485_v1 }
  0xb1   : > { %412 = vmatmul.mubr.msk.bf16.vlgmr.msra.gmra.mxu0 %vm241_vm3, %v234_v11  ;;  %v239_v12 = vpop.permute.xlu0 %238 }
 0x171   : > { %v279_v13 = vpop.f32.mrf.mxu0 }
 0x172   : > { %v280_v14 = vadd.f32 %v279_v13, %v239_v12 }
 0x173   : > { %v413_v15 = vpop.f32.mrf.mxu0 }
 0x174   : > { %v285_v16 = vmax.f32 %v280_v14, 0.0 }
 0x175   : > { %v282_v17 = vpop.f32.mrf.mxu0 }
 0x176   : > { %286 = vst [vmem:[%s202_s18] sm:$0xff] %v285_v16 }
 0x177   : > { %v414_v18 = vpop.f32.mrf.mxu0 }
 0x178   : > { %529 = shalt.err (!%p526_p6)
}
 0x179   : > { %s530_s6 = scalar_lea.hbm %s730_s23, 128  ;;  %s534_s8 = scalar_lea.hbm %s781_s3, 256 }
 0x17a   : > { %p531_p7 = scmp.ne.s32.totalorder %s730_s23, %s530_s6  ;;  %p535_p13 = scmp.lt.s32.totalorder %s730_s23, %s781_s3 }
 0x17b   : > { %p536_p2 = scmp.lt.s32.totalorder %s534_s8, %s530_s6 }
 0x17c   : > { %p532_p10 = pnand %p531_p7, %p678_p9 }
 0x17d   : > { %p537_p8 = por %p536_p2, %p535_p13 }
 0x17e   : > { %p533_p4 = pneg %p532_p10 }
 0x180   : > { %p538_p12 = pnand %p537_p8, %p533_p4 }
 0x182   : > { %541 = shalt.err (!%p538_p12)
}
 0x183   : > { %417 = dma.vmem_to_hbm [thread:$0]  (%p678_p9), %s732_s19, 128, %s730_s23, %s288_s29  }
 0x184 PF: > { %s314_s10 = sand.u32 1, %s576_s12   ;;  %p787_p0 = scmp.ge.s32.totalorder %s596_s17, 2 }
 0x185   : > { %s315_s11 = scalar_lea.sflag [#allocation4], %s314_s10 }
 0x186   : > { %p424_p1 = pnand %p787_p0, %p685_p11 }
 0x188   : > { %p425_p3 = pneg %p424_p1 }
 0x18a   : > { %571 = dma.done.wait (%p425_p3), %s315_s11, 128  }
 0x18b   : > { %573 = vsyncadd (%p425_p3), %s315_s11, 4294967168  ;;  %s19_s17 = sadd.s32 1, %s596_s17   ;;  %s788_s12 = smov %s580_s13 }
 0x18c   : > { %p16_p5 = scmp.ge.s32.totalorder %s19_s17, 4   ;;  %s789_s13 = smov %s584_s14 }
 0x18d   : > { %s790_s14 = smov %s683_s26  ;;  %s791_s15 = smov %s592_s16 }
 0x18e   : > { %s792_s16 = smov %s794_s20  ;;  %18 = sbr.rel (!%p16_p5) target bundleno = 6 (0x6), region = 78 }
 0x193   :  { %320 = vsyncpa [#allocation3], 1 }
 0x194   :  { %322 = vsyncpa [#allocation3 + $0x1], 1 }
 0x195   :  { %323 = vsyncpa [#allocation4], 1 }
 0x196   :  { %325 = vsyncpa [#allocation4 + $0x1], 1 }

</bundles_post_ra>
